<compile_context>
chip_gen: v7x
topology: tpu7x:2x2x1
jax: 0.10.0
libtpu: 0.0.40
codegen_flags: <defaults>
</compile_context>

<pallas_src>
import math

import numpy as np
import jax
import jax.numpy as jnp
from jax.experimental import pallas as pl
from jax.experimental.pallas import tpu as pltpu

LANE = 128
SUBLANE = 8
_LN_EPS = 1e-5


def _round_up(n, m):
    return ((n + m - 1) // m) * m


# ---------------------------------------------------------------------------
# Parameter construction (deterministic, synthetic -- mirrors torch mlp())
# ---------------------------------------------------------------------------
def init_mlp_params(key, input_size, layer_sizes, output_size):
    """Unpadded, torch-shaped parameters for Linear/LayerNorm/ReLU ... Linear."""
    params = []
    in_size = input_size
    for out_size in layer_sizes:
        key, kw, kb = jax.random.split(key, 3)
        w = jax.random.normal(kw, (in_size, out_size), jnp.float32) / jnp.sqrt(in_size)
        b = jax.random.normal(kb, (out_size,), jnp.float32) * 0.01
        params.append({"kind": "hidden", "w": w, "b": b,
                       "g": jnp.ones((out_size,), jnp.float32),
                       "beta": jnp.zeros((out_size,), jnp.float32)})
        in_size = out_size
    key, kw, kb = jax.random.split(key, 3)
    w = jax.random.normal(kw, (in_size, output_size), jnp.float32) / jnp.sqrt(in_size)
    b = jax.random.normal(kb, (output_size,), jnp.float32) * 0.01
    params.append({"kind": "out", "w": w, "b": b})
    return params


# ---------------------------------------------------------------------------
# Padding / packing: weights (lane-padded, bf16) + one packed vec operand
# ---------------------------------------------------------------------------
def _pad_mlp(params, input_size, weight_dtype, w_idx0, row0):
    """Zero-pad widths to 128 lanes. Returns (weights, vec_rows, plan, out_real,
    out_pad, next_w_idx, next_row).  The contraction dim of the FIRST layer is
    left natural (review: do not pad K)."""
    weights, vec_rows, plan = [], [], []
    k_real, k_pad = input_size, input_size
    out_real = out_pad = None
    w_idx, row = w_idx0, row0
    for p in params:
        n_real = p["w"].shape[1]
        n_pad = _round_up(n_real, LANE)
        w = (jnp.zeros((k_pad, n_pad), jnp.float32)
             .at[:k_real, :n_real].set(p["w"])
             .astype(weight_dtype))
        weights.append(w)
        b = jnp.zeros((n_pad,), jnp.float32).at[:n_real].set(p["b"])
        if p["kind"] == "hidden":
            g = jnp.zeros((n_pad,), jnp.float32).at[:n_real].set(p["g"])
            beta = jnp.zeros((n_pad,), jnp.float32).at[:n_real].set(p["beta"])
            vec_rows += [b, g, beta]
            plan.append(dict(kind="hidden", n_real=n_real, n_pad=n_pad,
                             w_idx=w_idx, row=row))
            row += 3
        else:
            vec_rows += [b]
            plan.append(dict(kind="out", n_real=n_real, n_pad=n_pad,
                             w_idx=w_idx, row=row))
            row += 1
            out_real, out_pad = n_real, n_pad
        w_idx += 1
        k_real, k_pad = n_real, n_pad
    return weights, vec_rows, plan, out_real, out_pad, w_idx, row


def _pack_vec_rows(vec_rows):
    """Pack all bias/gamma/beta vectors into one (rows_pad8, max_width) array."""
    width = _round_up(max(int(v.shape[0]) for v in vec_rows), LANE)
    n_rows = _round_up(len(vec_rows), SUBLANE)
    vec = jnp.zeros((n_rows, width), jnp.float32)
    for r, v in enumerate(vec_rows):
        vec = vec.at[r, : v.shape[0]].set(v)
    return vec


# ---------------------------------------------------------------------------
# Fused kernel
# ---------------------------------------------------------------------------
def _mlp_chain(x, w_refs, vec, plan):
    """Linear -> LayerNorm -> ReLU blocks + final Linear, resident in VMEM."""
    for layer in plan:
        n_real, n_pad, r = layer["n_real"], layer["n_pad"], layer["row"]
        w = w_refs[layer["w_idx"]][...]
        # MXU matmul in the weight dtype (bf16 by default), f32 accumulation.
        y = jnp.dot(x.astype(w.dtype), w, preferred_element_type=jnp.float32)
        y = y + vec[r:r + 1, :n_pad]                       # bias (f32)
        if layer["kind"] == "hidden":
            inv_n = 1.0 / float(n_real)
            mean = jnp.sum(y, axis=-1, keepdims=True) * inv_n
            d = y - mean
            if n_pad != n_real:                            # mask padded lanes
                lane = jax.lax.broadcasted_iota(jnp.int32, (1, n_pad), 1)
                d = jnp.where(lane < n_real, d, 0.0)
            var = jnp.sum(d * d, axis=-1, keepdims=True) * inv_n   # two-pass LN
            xn = d * jax.lax.rsqrt(var + _LN_EPS)
            # padded lanes: xn=0, gamma=beta=0 -> activation stays exactly 0
            x = jnp.maximum(xn * vec[r + 1:r + 2, :n_pad] + vec[r + 2:r + 3, :n_pad],
                            0.0)
        else:
            x = y
    return x


def _make_fused_kernel(n_weights, pol_plan, val_plan):
    def kernel(xp_ref, xv_ref, vec_ref, *rest):
        w_refs = rest[:n_weights]
        pol_out_ref, val_out_ref = rest[n_weights], rest[n_weights + 1]
        vec = vec_ref[...]
        xp = xp_ref[...].astype(jnp.float32)
        xv = xv_ref[...].astype(jnp.float32)
        pol_out_ref[...] = _mlp_chain(xp, w_refs, vec, pol_plan).astype(pol_out_ref.dtype)
        val_out_ref[...] = _mlp_chain(xv, w_refs, vec, val_plan).astype(val_out_ref.dtype)
    return kernel


# ---------------------------------------------------------------------------
# PredictionNetwork forward (single fused pallas_call)
# ---------------------------------------------------------------------------
def prediction_forward(policy_params, value_params, hidden_states, *,
                       batch_tile=256, weight_dtype=jnp.bfloat16):
    """hidden_states: (B, A, H) -> (policy_logits (B, A, act), value (B, 1))."""
    B, A, H = hidden_states.shape
    x_pol = hidden_states.reshape(B * A, H)    # per-agent rows (free reshape)
    x_val = hidden_states.reshape(B, A * H)    # centralized rows (free reshape)
    # NOTE: x_pol / x_val are the same HBM bytes fetched twice per grid step.
    # Deriving x_pol from x_val in-kernel would force a lane-relayout, so the
    # duplicate fetch is kept (review: only revisit if profiled input-bound).

    pol_w, pol_rows, pol_plan, pol_out_real, pol_out_pad, w_idx, row = _pad_mlp(
        policy_params, H, weight_dtype, 0, 0)
    val_w, val_rows, val_plan, val_out_real, val_out_pad, w_idx, row = _pad_mlp(
        value_params, A * H, weight_dtype, w_idx, row)
    weights = pol_w + val_w
    vec = _pack_vec_rows(pol_rows + val_rows)   # one operand for all b/g/beta

    # --- batch tiling -------------------------------------------------------
    tb = max(1, min(B, int(batch_tile)))
    if tb < B:
        # (8,128) rule: a partial second-to-last block dim must divide by 8.
        tb = max(SUBLANE, (tb // SUBLANE) * SUBLANE)
    elif B >= 2 * SUBLANE:
        # Give the grid >= 2 steps so v7x megacore can shard the batch axis.
        tb = min(B, _round_up(pl.cdiv(B, 2), SUBLANE))
        if tb >= B:
            tb = B
    grid = (pl.cdiv(B, tb),)

    in_dtype = hidden_states.dtype
    out_shapes = (
        jax.ShapeDtypeStruct((B * A, pol_out_pad), in_dtype),
        jax.ShapeDtypeStruct((B, val_out_pad), in_dtype),
    )

    # --- computed VMEM budget ------------------------------------------------
    def _nbytes(shape, dtype):
        return math.prod(shape) * np.dtype(dtype).itemsize

    resident_bytes = (sum(_nbytes(w.shape, w.dtype) for w in weights)     # x1 (Buffered(1))
                      + _nbytes(vec.shape, vec.dtype))
    stream_bytes = 2 * (_nbytes((tb * A, H), in_dtype)                    # x2 (double buffer)
                        + _nbytes((tb, A * H), in_dtype)
                        + _nbytes((tb * A, pol_out_pad), in_dtype)
                        + _nbytes((tb, val_out_pad), in_dtype))
    need = resident_bytes + stream_bytes
    try:
        vmem_cap = int(pltpu.get_tpu_info().vmem_capacity_bytes)
    except Exception:
        vmem_cap = 64 * 1024 * 1024        # conservative: v7x per-TC VMEM
    vmem_limit = int(need * 1.25) + (4 << 20)
    vmem_limit = max(vmem_limit, 32 << 20)
    vmem_limit = min(vmem_limit, int(vmem_cap * 0.75))

    def _resident(arr):
        # Constant index_map -> block is fetched once; single-buffer it.
        return pl.BlockSpec(arr.shape, lambda i: (0, 0),
                            pipeline_mode=pl.Buffered(1))

    kernel = _make_fused_kernel(len(weights), pol_plan, val_plan)

    pol_out, val_out = pl.pallas_call(
        kernel,
        out_shape=out_shapes,
        grid=grid,
        in_specs=[
            pl.BlockSpec((tb * A, H), lambda i: (i, 0)),
            pl.BlockSpec((tb, A * H), lambda i: (i, 0)),
            _resident(vec),
        ] + [_resident(w) for w in weights],
        out_specs=(
            pl.BlockSpec((tb * A, pol_out_pad), lambda i: (i, 0)),
            pl.BlockSpec((tb, val_out_pad), lambda i: (i, 0)),
        ),
        compiler_params=pltpu.CompilerParams(
            dimension_semantics=("parallel",),
            vmem_limit_bytes=vmem_limit,
        ),
    )(x_pol, x_val, vec, *weights)

    policy_logits = pol_out[:, :pol_out_real].reshape(B, A, pol_out_real)
    value = val_out[:, :val_out_real]
    return policy_logits, value


# ---------------------------------------------------------------------------
# Pure-JAX reference (matches the PyTorch module) for correctness check
# ---------------------------------------------------------------------------
def _mlp_ref(params, x):
    for p in params:
        if p["kind"] == "hidden":
            y = x @ p["w"] + p["b"]
            mean = jnp.mean(y, axis=-1, keepdims=True)
            var = jnp.mean((y - mean) ** 2, axis=-1, keepdims=True)
            y = (y - mean) * jax.lax.rsqrt(var + _LN_EPS)
            x = jnp.maximum(y * p["g"] + p["beta"], 0.0)
        else:
            x = x @ p["w"] + p["b"]
    return x


def _reference_forward(policy_params, value_params, hidden_states):
    B, A, H = hidden_states.shape
    value = _mlp_ref(value_params, hidden_states.reshape(B, A * H))
    pol = _mlp_ref(policy_params, hidden_states.reshape(B * A, H))
    return pol.reshape(B, A, -1), value


if __name__ == "__main__":
    batch_size = 2
    num_agents = 4
    hidden_state_size = 32
    action_space_size = 8
    fc_policy_layers = [32, 32]
    fc_value_layers = [32]

    key = jax.random.PRNGKey(0)
    k_in, k_pol, k_val = jax.random.split(key, 3)

    hidden_states = jax.random.normal(
        k_in, (batch_size, num_agents, hidden_state_size), jnp.float32
    )

    policy_params = init_mlp_params(
        k_pol, hidden_state_size, fc_policy_layers, action_space_size
    )
    value_params = init_mlp_params(
        k_val, num_agents * hidden_state_size, fc_value_layers, 1
    )

    ref_pol, ref_val = _reference_forward(policy_params, value_params, hidden_states)

    # --- f32-weight path: bit-level check vs the torch-equivalent reference ---
    fwd_f32 = jax.jit(lambda hs: prediction_forward(
        policy_params, value_params, hs, weight_dtype=jnp.float32))
    pol32, val32 = fwd_f32(hidden_states)
    jax.block_until_ready((pol32, val32))
    assert pol32.shape == (batch_size, num_agents, action_space_size)
    assert val32.shape == (batch_size, 1)
    assert jnp.allclose(pol32, ref_pol, atol=1e-4, rtol=1e-4)
    assert jnp.allclose(val32, ref_val, atol=1e-4, rtol=1e-4)

    # --- default bf16-MXU path: looser tolerance vs the f32 reference --------
    fwd = jax.jit(lambda hs: prediction_forward(policy_params, value_params, hs))
    policy_logits, value = fwd(hidden_states)
    jax.block_until_ready((policy_logits, value))
    assert policy_logits.shape == (batch_size, num_agents, action_space_size)
    assert value.shape == (batch_size, 1)
    assert jnp.allclose(policy_logits, ref_pol, atol=5e-2, rtol=5e-2)
    assert jnp.allclose(value, ref_val, atol=5e-2, rtol=5e-2)

    print("KERNEL_OK")
</pallas_src>

<mosaic_0001>
module attributes {stable_mosaic.version = 11 : i64} {
  func.func @kernel(%arg0: i32, %arg1: memref<8x32xf32, #tpu.memory_space<vmem>>, %arg2: memref<2x128xf32, #tpu.memory_space<vmem>>, %arg3: memref<16x128xf32, #tpu.memory_space<vmem>>, %arg4: memref<32x128xf32, #tpu.memory_space<vmem>>, %arg5: memref<128x128xf32, #tpu.memory_space<vmem>>, %arg6: memref<128x128xf32, #tpu.memory_space<vmem>>, %arg7: memref<128x128xf32, #tpu.memory_space<vmem>>, %arg8: memref<128x128xf32, #tpu.memory_space<vmem>>, %arg9: memref<8x128xf32, #tpu.memory_space<vmem>>, %arg10: memref<2x128xf32, #tpu.memory_space<vmem>>) attributes {dimension_semantics = [#tpu.dimension_semantics<parallel>], iteration_bounds = array<i64: 1>, scalar_prefetch = 0 : i64, scratch_operands = 0 : i64, tpu.core_type = #tpu.core_type<tc>, window_params = [{transform_indices = @transform_0, window_bounds = array<i64: 8, 32>}, {transform_indices = @transform_1, window_bounds = array<i64: 2, 128>}, {pipeline_mode = #tpu.pipeline_mode<synchronous>, transform_indices = @transform_2, window_bounds = array<i64: 16, 128>}, {pipeline_mode = #tpu.pipeline_mode<synchronous>, transform_indices = @transform_3, window_bounds = array<i64: 32, 128>}, {pipeline_mode = #tpu.pipeline_mode<synchronous>, transform_indices = @transform_4, window_bounds = array<i64: 128, 128>}, {pipeline_mode = #tpu.pipeline_mode<synchronous>, transform_indices = @transform_5, window_bounds = array<i64: 128, 128>}, {pipeline_mode = #tpu.pipeline_mode<synchronous>, transform_indices = @transform_6, window_bounds = array<i64: 128, 128>}, {pipeline_mode = #tpu.pipeline_mode<synchronous>, transform_indices = @transform_7, window_bounds = array<i64: 128, 128>}, {transform_indices = @transform_8, window_bounds = array<i64: 8, 128>}, {transform_indices = @transform_9, window_bounds = array<i64: 2, 128>}]} {
    %c0 = arith.constant 0 : index
    %c0_0 = arith.constant 0 : index
    %0 = vector.load %arg3[%c0, %c0_0] : memref<16x128xf32, #tpu.memory_space<vmem>>, vector<16x128xf32>
    %c0_1 = arith.constant 0 : index
    %c0_2 = arith.constant 0 : index
    %1 = vector.load %arg1[%c0_1, %c0_2] : memref<8x32xf32, #tpu.memory_space<vmem>>, vector<8x32xf32>
    %c0_3 = arith.constant 0 : index
    %c0_4 = arith.constant 0 : index
    %2 = vector.load %arg2[%c0_3, %c0_4] : memref<2x128xf32, #tpu.memory_space<vmem>>, vector<2x128xf32>
    %c0_5 = arith.constant 0 : index
    %c0_6 = arith.constant 0 : index
    %3 = vector.load %arg4[%c0_5, %c0_6] : memref<32x128xf32, #tpu.memory_space<vmem>>, vector<32x128xf32>
    %cst = arith.constant dense<0.000000e+00> : vector<8x128xf32>
    %4 = tpu.matmul %1, %3, %cst {dimension_numbers = #tpu.dot_dimension_numbers<[1], [0], [0], [1], [0, 0, 1, 1], [], []>} : vector<8x32xf32>, vector<32x128xf32>, vector<8x128xf32> -> vector<8x128xf32>
    %5 = vector.extract_strided_slice %0 {offsets = [0, 0], sizes = [1, 128], strides = [1, 1]} : vector<16x128xf32> to vector<1x128xf32>
    %6 = vector.broadcast %5 : vector<1x128xf32> to vector<8x128xf32>
    %7 = arith.addf %4, %6 : vector<8x128xf32>
    %cst_7 = arith.constant dense<0.000000e+00> : vector<8xf32>
    %8 = vector.multi_reduction <add>, %7, %cst_7 [1] : vector<8x128xf32> to vector<8xf32>
    %9 = vector.shape_cast %8 : vector<8xf32> to vector<8x1xf32>
    %cst_8 = arith.constant 3.125000e-02 : f32
    %10 = vector.broadcast %cst_8 : f32 to vector<8x1xf32>
    %11 = arith.mulf %9, %10 : vector<8x1xf32>
    %12 = vector.broadcast %11 : vector<8x1xf32> to vector<8x128xf32>
    %13 = arith.subf %7, %12 : vector<8x128xf32>
    %14 = tpu.iota {dimensions = array<i32: 1>} : vector<1x128xi32>
    %c32_i32 = arith.constant 32 : i32
    %15 = vector.broadcast %c32_i32 : i32 to vector<1x128xi32>
    %16 = arith.cmpi slt, %14, %15 : vector<1x128xi32>
    %cst_9 = arith.constant 0.000000e+00 : f32
    %17 = vector.shape_cast %16 : vector<1x128xi1> to vector<1x128xi1>
    %18 = vector.broadcast %17 : vector<1x128xi1> to vector<8x128xi1>
    %19 = vector.broadcast %cst_9 : f32 to vector<8x128xf32>
    %20 = arith.select %18, %13, %19 : vector<8x128xi1>, vector<8x128xf32>
    %21 = arith.mulf %20, %20 : vector<8x128xf32>
    %cst_10 = arith.constant dense<0.000000e+00> : vector<8xf32>
    %22 = vector.multi_reduction <add>, %21, %cst_10 [1] : vector<8x128xf32> to vector<8xf32>
    %23 = vector.shape_cast %22 : vector<8xf32> to vector<8x1xf32>
    %cst_11 = arith.constant 3.125000e-02 : f32
    %24 = vector.broadcast %cst_11 : f32 to vector<8x1xf32>
    %25 = arith.mulf %23, %24 : vector<8x1xf32>
    %cst_12 = arith.constant 9.99999974E-6 : f32
    %26 = vector.broadcast %cst_12 : f32 to vector<8x1xf32>
    %27 = arith.addf %25, %26 : vector<8x1xf32>
    %28 = math.rsqrt %27 : vector<8x1xf32>
    %29 = vector.broadcast %28 : vector<8x1xf32> to vector<8x128xf32>
    %30 = arith.mulf %20, %29 : vector<8x128xf32>
    %31 = vector.extract_strided_slice %0 {offsets = [1, 0], sizes = [1, 128], strides = [1, 1]} : vector<16x128xf32> to vector<1x128xf32>
    %32 = vector.broadcast %31 : vector<1x128xf32> to vector<8x128xf32>
    %33 = arith.mulf %30, %32 : vector<8x128xf32>
    %34 = vector.extract_strided_slice %0 {offsets = [2, 0], sizes = [1, 128], strides = [1, 1]} : vector<16x128xf32> to vector<1x128xf32>
    %35 = vector.broadcast %34 : vector<1x128xf32> to vector<8x128xf32>
    %36 = arith.addf %33, %35 : vector<8x128xf32>
    %cst_13 = arith.constant 0.000000e+00 : f32
    %37 = vector.broadcast %cst_13 : f32 to vector<8x128xf32>
    %38 = arith.maximumf %36, %37 : vector<8x128xf32>
    %c0_14 = arith.constant 0 : index
    %c0_15 = arith.constant 0 : index
    %39 = vector.load %arg5[%c0_14, %c0_15] : memref<128x128xf32, #tpu.memory_space<vmem>>, vector<128x128xf32>
    %cst_16 = arith.constant dense<0.000000e+00> : vector<8x128xf32>
    %40 = tpu.matmul %38, %39, %cst_16 {dimension_numbers = #tpu.dot_dimension_numbers<[1], [0], [0], [1], [0, 0, 1, 1], [], []>} : vector<8x128xf32>, vector<128x128xf32>, vector<8x128xf32> -> vector<8x128xf32>
    %41 = vector.extract_strided_slice %0 {offsets = [3, 0], sizes = [1, 128], strides = [1, 1]} : vector<16x128xf32> to vector<1x128xf32>
    %42 = vector.broadcast %41 : vector<1x128xf32> to vector<8x128xf32>
    %43 = arith.addf %40, %42 : vector<8x128xf32>
    %cst_17 = arith.constant dense<0.000000e+00> : vector<8xf32>
    %44 = vector.multi_reduction <add>, %43, %cst_17 [1] : vector<8x128xf32> to vector<8xf32>
    %45 = vector.shape_cast %44 : vector<8xf32> to vector<8x1xf32>
    %cst_18 = arith.constant 3.125000e-02 : f32
    %46 = vector.broadcast %cst_18 : f32 to vector<8x1xf32>
    %47 = arith.mulf %45, %46 : vector<8x1xf32>
    %48 = vector.broadcast %47 : vector<8x1xf32> to vector<8x128xf32>
    %49 = arith.subf %43, %48 : vector<8x128xf32>
    %50 = tpu.iota {dimensions = array<i32: 1>} : vector<1x128xi32>
    %c32_i32_19 = arith.constant 32 : i32
    %51 = vector.broadcast %c32_i32_19 : i32 to vector<1x128xi32>
    %52 = arith.cmpi slt, %50, %51 : vector<1x128xi32>
    %cst_20 = arith.constant 0.000000e+00 : f32
    %53 = vector.shape_cast %52 : vector<1x128xi1> to vector<1x128xi1>
    %54 = vector.broadcast %53 : vector<1x128xi1> to vector<8x128xi1>
    %55 = vector.broadcast %cst_20 : f32 to vector<8x128xf32>
    %56 = arith.select %54, %49, %55 : vector<8x128xi1>, vector<8x128xf32>
    %57 = arith.mulf %56, %56 : vector<8x128xf32>
    %cst_21 = arith.constant dense<0.000000e+00> : vector<8xf32>
    %58 = vector.multi_reduction <add>, %57, %cst_21 [1] : vector<8x128xf32> to vector<8xf32>
    %59 = vector.shape_cast %58 : vector<8xf32> to vector<8x1xf32>
    %cst_22 = arith.constant 3.125000e-02 : f32
    %60 = vector.broadcast %cst_22 : f32 to vector<8x1xf32>
    %61 = arith.mulf %59, %60 : vector<8x1xf32>
    %cst_23 = arith.constant 9.99999974E-6 : f32
    %62 = vector.broadcast %cst_23 : f32 to vector<8x1xf32>
    %63 = arith.addf %61, %62 : vector<8x1xf32>
    %64 = math.rsqrt %63 : vector<8x1xf32>
    %65 = vector.broadcast %64 : vector<8x1xf32> to vector<8x128xf32>
    %66 = arith.mulf %56, %65 : vector<8x128xf32>
    %67 = vector.extract_strided_slice %0 {offsets = [4, 0], sizes = [1, 128], strides = [1, 1]} : vector<16x128xf32> to vector<1x128xf32>
    %68 = vector.broadcast %67 : vector<1x128xf32> to vector<8x128xf32>
    %69 = arith.mulf %66, %68 : vector<8x128xf32>
    %70 = vector.extract_strided_slice %0 {offsets = [5, 0], sizes = [1, 128], strides = [1, 1]} : vector<16x128xf32> to vector<1x128xf32>
    %71 = vector.broadcast %70 : vector<1x128xf32> to vector<8x128xf32>
    %72 = arith.addf %69, %71 : vector<8x128xf32>
    %cst_24 = arith.constant 0.000000e+00 : f32
    %73 = vector.broadcast %cst_24 : f32 to vector<8x128xf32>
    %74 = arith.maximumf %72, %73 : vector<8x128xf32>
    %c0_25 = arith.constant 0 : index
    %c0_26 = arith.constant 0 : index
    %75 = vector.load %arg6[%c0_25, %c0_26] : memref<128x128xf32, #tpu.memory_space<vmem>>, vector<128x128xf32>
    %cst_27 = arith.constant dense<0.000000e+00> : vector<8x128xf32>
    %76 = tpu.matmul %74, %75, %cst_27 {dimension_numbers = #tpu.dot_dimension_numbers<[1], [0], [0], [1], [0, 0, 1, 1], [], []>} : vector<8x128xf32>, vector<128x128xf32>, vector<8x128xf32> -> vector<8x128xf32>
    %77 = vector.extract_strided_slice %0 {offsets = [6, 0], sizes = [1, 128], strides = [1, 1]} : vector<16x128xf32> to vector<1x128xf32>
    %78 = vector.broadcast %77 : vector<1x128xf32> to vector<8x128xf32>
    %79 = arith.addf %76, %78 : vector<8x128xf32>
    %c0_28 = arith.constant 0 : index
    %c0_29 = arith.constant 0 : index
    %80 = vector.load %arg9[%c0_28, %c0_29] : memref<8x128xf32, #tpu.memory_space<vmem>>, vector<8x128xf32>
    tpu.vector_store %arg9[%c0_28, %c0_29], %79 {strides = array<i32>} : memref<8x128xf32, #tpu.memory_space<vmem>>, vector<8x128xf32>,
    %c0_30 = arith.constant 0 : index
    %c0_31 = arith.constant 0 : index
    %81 = vector.load %arg7[%c0_30, %c0_31] : memref<128x128xf32, #tpu.memory_space<vmem>>, vector<128x128xf32>
    %cst_32 = arith.constant dense<0.000000e+00> : vector<2x128xf32>
    %82 = tpu.matmul %2, %81, %cst_32 {dimension_numbers = #tpu.dot_dimension_numbers<[1], [0], [0], [1], [0, 0, 1, 1], [], []>} : vector<2x128xf32>, vector<128x128xf32>, vector<2x128xf32> -> vector<2x128xf32>
    %83 = vector.extract_strided_slice %0 {offsets = [7, 0], sizes = [1, 128], strides = [1, 1]} : vector<16x128xf32> to vector<1x128xf32>
    %84 = vector.broadcast %83 : vector<1x128xf32> to vector<2x128xf32>
    %85 = arith.addf %82, %84 : vector<2x128xf32>
    %cst_33 = arith.constant dense<0.000000e+00> : vector<2xf32>
    %86 = vector.multi_reduction <add>, %85, %cst_33 [1] : vector<2x128xf32> to vector<2xf32>
    %87 = vector.shape_cast %86 : vector<2xf32> to vector<2x1xf32>
    %cst_34 = arith.constant 3.125000e-02 : f32
    %88 = vector.broadcast %cst_34 : f32 to vector<2x1xf32>
    %89 = arith.mulf %87, %88 : vector<2x1xf32>
    %90 = vector.broadcast %89 : vector<2x1xf32> to vector<2x128xf32>
    %91 = arith.subf %85, %90 : vector<2x128xf32>
    %92 = tpu.iota {dimensions = array<i32: 1>} : vector<1x128xi32>
    %c32_i32_35 = arith.constant 32 : i32
    %93 = vector.broadcast %c32_i32_35 : i32 to vector<1x128xi32>
    %94 = arith.cmpi slt, %92, %93 : vector<1x128xi32>
    %cst_36 = arith.constant 0.000000e+00 : f32
    %95 = vector.shape_cast %94 : vector<1x128xi1> to vector<1x128xi1>
    %96 = vector.broadcast %95 : vector<1x128xi1> to vector<2x128xi1>
    %97 = vector.broadcast %cst_36 : f32 to vector<2x128xf32>
    %98 = arith.select %96, %91, %97 : vector<2x128xi1>, vector<2x128xf32>
    %99 = arith.mulf %98, %98 : vector<2x128xf32>
    %cst_37 = arith.constant dense<0.000000e+00> : vector<2xf32>
    %100 = vector.multi_reduction <add>, %99, %cst_37 [1] : vector<2x128xf32> to vector<2xf32>
    %101 = vector.shape_cast %100 : vector<2xf32> to vector<2x1xf32>
    %cst_38 = arith.constant 3.125000e-02 : f32
    %102 = vector.broadcast %cst_38 : f32 to vector<2x1xf32>
    %103 = arith.mulf %101, %102 : vector<2x1xf32>
    %cst_39 = arith.constant 9.99999974E-6 : f32
    %104 = vector.broadcast %cst_39 : f32 to vector<2x1xf32>
    %105 = arith.addf %103, %104 : vector<2x1xf32>
    %106 = math.rsqrt %105 : vector<2x1xf32>
    %107 = vector.broadcast %106 : vector<2x1xf32> to vector<2x128xf32>
    %108 = arith.mulf %98, %107 : vector<2x128xf32>
    %109 = vector.extract_strided_slice %0 {offsets = [8, 0], sizes = [1, 128], strides = [1, 1]} : vector<16x128xf32> to vector<1x128xf32>
    %110 = vector.broadcast %109 : vector<1x128xf32> to vector<2x128xf32>
    %111 = arith.mulf %108, %110 : vector<2x128xf32>
    %112 = vector.extract_strided_slice %0 {offsets = [9, 0], sizes = [1, 128], strides = [1, 1]} : vector<16x128xf32> to vector<1x128xf32>
    %113 = vector.broadcast %112 : vector<1x128xf32> to vector<2x128xf32>
    %114 = arith.addf %111, %113 : vector<2x128xf32>
    %cst_40 = arith.constant 0.000000e+00 : f32
    %115 = vector.broadcast %cst_40 : f32 to vector<2x128xf32>
    %116 = arith.maximumf %114, %115 : vector<2x128xf32>
    %c0_41 = arith.constant 0 : index
    %c0_42 = arith.constant 0 : index
    %117 = vector.load %arg8[%c0_41, %c0_42] : memref<128x128xf32, #tpu.memory_space<vmem>>, vector<128x128xf32>
    %cst_43 = arith.constant dense<0.000000e+00> : vector<2x128xf32>
    %118 = tpu.matmul %116, %117, %cst_43 {dimension_numbers = #tpu.dot_dimension_numbers<[1], [0], [0], [1], [0, 0, 1, 1], [], []>} : vector<2x128xf32>, vector<128x128xf32>, vector<2x128xf32> -> vector<2x128xf32>
    %119 = vector.extract_strided_slice %0 {offsets = [10, 0], sizes = [1, 128], strides = [1, 1]} : vector<16x128xf32> to vector<1x128xf32>
    %120 = vector.broadcast %119 : vector<1x128xf32> to vector<2x128xf32>
    %121 = arith.addf %118, %120 : vector<2x128xf32>
    %c0_44 = arith.constant 0 : index
    %c0_45 = arith.constant 0 : index
    %122 = vector.load %arg10[%c0_44, %c0_45] : memref<2x128xf32, #tpu.memory_space<vmem>>, vector<2x128xf32>
    tpu.vector_store %arg10[%c0_44, %c0_45], %121 {strides = array<i32>} : memref<2x128xf32, #tpu.memory_space<vmem>>, vector<2x128xf32>,
    return
  }
  func.func @transform_0(%arg0: i32) -> (i32, i32) {
    %c0_i32 = arith.constant 0 : i32
    %c0_i32_0 = arith.constant 0 : i32
    return %arg0, %c0_i32 : i32, i32
  }
  func.func @transform_1(%arg0: i32) -> (i32, i32) {
    %c0_i32 = arith.constant 0 : i32
    %c0_i32_0 = arith.constant 0 : i32
    return %arg0, %c0_i32 : i32, i32
  }
  func.func @transform_2(%arg0: i32) -> (i32, i32) {
    %c0_i32 = arith.constant 0 : i32
    %c0_i32_0 = arith.constant 0 : i32
    %c0_i32_1 = arith.constant 0 : i32
    return %c0_i32, %c0_i32_0 : i32, i32
  }
  func.func @transform_3(%arg0: i32) -> (i32, i32) {
    %c0_i32 = arith.constant 0 : i32
    %c0_i32_0 = arith.constant 0 : i32
    %c0_i32_1 = arith.constant 0 : i32
    return %c0_i32, %c0_i32_0 : i32, i32
  }
  func.func @transform_4(%arg0: i32) -> (i32, i32) {
    %c0_i32 = arith.constant 0 : i32
    %c0_i32_0 = arith.constant 0 : i32
    %c0_i32_1 = arith.constant 0 : i32
    return %c0_i32, %c0_i32_0 : i32, i32
  }
  func.func @transform_5(%arg0: i32) -> (i32, i32) {
    %c0_i32 = arith.constant 0 : i32
    %c0_i32_0 = arith.constant 0 : i32
    %c0_i32_1 = arith.constant 0 : i32
    return %c0_i32, %c0_i32_0 : i32, i32
  }
  func.func @transform_6(%arg0: i32) -> (i32, i32) {
    %c0_i32 = arith.constant 0 : i32
    %c0_i32_0 = arith.constant 0 : i32
    %c0_i32_1 = arith.constant 0 : i32
    return %c0_i32, %c0_i32_0 : i32, i32
  }
  func.func @transform_7(%arg0: i32) -> (i32, i32) {
    %c0_i32 = arith.constant 0 : i32
    %c0_i32_0 = arith.constant 0 : i32
    %c0_i32_1 = arith.constant 0 : i32
    return %c0_i32, %c0_i32_0 : i32, i32
  }
  func.func @transform_8(%arg0: i32) -> (i32, i32) {
    %c0_i32 = arith.constant 0 : i32
    %c0_i32_0 = arith.constant 0 : i32
    return %arg0, %c0_i32 : i32, i32
  }
  func.func @transform_9(%arg0: i32) -> (i32, i32) {
    %c0_i32 = arith.constant 0 : i32
    %c0_i32_0 = arith.constant 0 : i32
    return %arg0, %c0_i32 : i32, i32
  }
}

</mosaic_0001>

<bundles_post_ra>
// kernel: _lambda_.1
= control target key start
LH: loop header
LB: loop body
LE: loop exit
PB: predicated region body
PF: predicated region fallthrough
CT: control target
= control target key end

     0   :  { %v936_v3 = vmov 0.0|0.0   ;;  %vm937_vm0 = vmmov 0   ;;  %v938_v6 = vmov 0.0   ;;  %s1313_s0 = inlined_call_operand.vmem [shape: f32[8,32], index: 0, kind: input, shape index: {}]   ;;  %s1314_s1 = inlined_call_operand.vmem [shape: f32[2,128], index: 1, kind: input, shape index: {}]   ;;  %s1315_s2 = inlined_call_operand.vmem [shape: f32[16,128], index: 2, kind: input, shape index: {}]   ;;  %s1316_s3 = inlined_call_operand.vmem [shape: f32[32,128], index: 3, kind: input, shape index: {}]   ;;  %s1317_s4 = inlined_call_operand.vmem [shape: f32[128,128], index: 4, kind: input, shape index: {}]   ;;  %s1318_s5 = inlined_call_operand.vmem [shape: f32[128,128], index: 5, kind: input, shape index: {}]   ;;  %s1319_s6 = inlined_call_operand.vmem [shape: f32[128,128], index: 6, kind: input, shape index: {}]   ;;  %s1320_s7 = inlined_call_operand.vmem [shape: f32[128,128], index: 7, kind: input, shape index: {}]   ;;  %s1321_s8 = inlined_call_operand.hbm [shape: f32[8,128], index: 8, kind: output, shape index: {0}]   ;;  %s1322_s9 = inlined_call_operand.vmem [shape: f32[2,128], index: 9, kind: output, shape index: {1}]  }
   0x1   :  { %v36_v0 = vld [vmem:[%s1316_s3] sm:$0xff]  ;;  %v37_v1 = vld [vmem:[%s1316_s3 + $0x8] sm:$0xff]  ;;  %v38_v2 = vld [vmem:[%s1316_s3 + $0x10] sm:$0xff]  ;;  %800 = vmatprep.subr.bf16.mxu0 %v936_v3  ;;  %657 = vmatprep.mubr.msk.f32.mxu0 %vm937_vm0, %v938_v6 }
   0x2   :  { %v801_v4 = vpack.c.bf16 %v37_v1, %v36_v0  ;;  %v39_v5 = vld [vmem:[%s1316_s3 + $0x18] sm:$0xff]  ;;  %806 = vmatprep.subr.bf16.mxu1 %v936_v3  ;;  %692 = vmatprep.mubr.msk.f32.mxu1 %vm937_vm0, %v938_v6 }
   0x3   :  { %15 = vsyncpa [#allocation3], 0  ;;  %v804_v7 = vpack.c.bf16 %v39_v5, %v38_v2  ;;  %v34_v8 = vld [vmem:[%s1313_s0] sm:$0xff]  ;;  %vm44_vm1 = vcmask 261120   ;;  %v40_v9 = vlaneseq  ;;  %v147_v18 = vld [vmem:[%s1317_s4 + $0x8] sm:$0xff]  ;;  %vm440_vm3 = vcmask 1041408  }
   0x4   :  { %802 = vmatpush3.bf16.msra.mxu0 %v801_v4  ;;  %v1021_v12 = vld [vmem:[%s1315_s2] sm:$0xff]  ;;  %v148_v19 = vld [vmem:[%s1317_s4 + $0x10] sm:$0xff]  ;;  %v149_v21 = vld [vmem:[%s1317_s4 + $0x18] sm:$0xff] }
   0x5   :  { %803 = vmatprep.subr.bf16.mxu0 %v936_v3  ;;  %v1015_v10 = vshrl.u32 %v40_v9, 7  ;;  %v146_v17 = vld [vmem:[%s1317_s4] sm:$0xff]  ;;  %v810_v22 = vpack.c.bf16 %v149_v21, %v148_v19  ;;  %v151_v24 = vld [vmem:[%s1317_s4 + $0x28] sm:$0xff]  ;;  %v1047_v26 = vand.u32 127, %v40_v9  ;;  %v152_v32 = vld [vmem:[%s1317_s4 + $0x30] sm:$0xff] }
   0x6   :  { %v807_v20 = vpack.c.bf16 %v147_v18, %v146_v17  ;;  %v150_v23 = vld [vmem:[%s1317_s4 + $0x20] sm:$0xff]  ;;  %v153_v33 = vld [vmem:[%s1317_s4 + $0x38] sm:$0xff]  ;;  %v155_v36 = vld [vmem:[%s1317_s4 + $0x48] sm:$0xff] }
   0x7   :  { %v42_v11 = vsub.s32 0, %v1015_v10  ;;  %v813_v25 = vpack.c.bf16 %v151_v24, %v150_v23  ;;  %vm124_vm2 = vcmp.lt.s32.totalorder %v1047_v26, 32  ;;  %v816_v34 = vpack.c.bf16 %v153_v33, %v152_v32  ;;  %v154_v35 = vld [vmem:[%s1317_s4 + $0x40] sm:$0xff]  ;;  %v156_v37 = vld [vmem:[%s1317_s4 + $0x50] sm:$0xff]  ;;  %v157_v39 = vld [vmem:[%s1317_s4 + $0x58] sm:$0xff] }
   0x8   :  { %805 = vmatpush3.bf16.msra.mxu0 %v804_v7  ;;  %808 = vmatpush3.bf16.msra.mxu1 %v807_v20  ;;  %v819_v38 = vpack.c.bf16 %v155_v36, %v154_v35  ;;  %v822_v40 = vpack.c.bf16 %v157_v39, %v156_v37  ;;  %v158_v41 = vld [vmem:[%s1317_s4 + $0x60] sm:$0xff]  ;;  %v159_v42 = vld [vmem:[%s1317_s4 + $0x68] sm:$0xff]  ;;  %v160_v44 = vld [vmem:[%s1317_s4 + $0x70] sm:$0xff]  ;;  %v137_v50 = vsub.s32 1, %v1015_v10  ;;  %v142_v51 = vsub.s32 2, %v1015_v10 }
   0x9   :  { %830 = vmatprep.subr.bf16.mxu0 %v936_v3  ;;  %v43_v13 = vrot.slane %v1021_v12, %v42_v11  ;;  %809 = vmatprep.subr.bf16.mxu1 %v936_v3  ;;  %v825_v43 = vpack.c.bf16 %v159_v42, %v158_v41  ;;  %v161_v45 = vld [vmem:[%s1317_s4 + $0x78] sm:$0xff]  ;;  %v350_v57 = vld [vmem:[%s1319_s6] sm:$0xff]  ;;  %v351_v58 = vld [vmem:[%s1319_s6 + $0x8] sm:$0xff]  ;;  %v250_v26 = vsub.s32 4, %v1015_v10 }
   0xa   :  { %v828_v46 = vpack.c.bf16 %v161_v45, %v160_v44  ;;  %v138_v52 = vrot.slane %v1021_v12, %v137_v50  ;;  %v143_v55 = vrot.slane %v1021_v12, %v142_v51  ;;  %v855_v60 = vpack.c.bf16 %v351_v58, %v350_v57  ;;  %v352_v62 = vld [vmem:[%s1319_s6 + $0x10] sm:$0xff]  ;;  %v353_v63 = vld [vmem:[%s1319_s6 + $0x18] sm:$0xff]  ;;  %v354_v1 = vld [vmem:[%s1319_s6 + $0x20] sm:$0xff] }
   0xb   :  { %658 = vmatmul.mubr.msk.f32.vlgmr.msra.gmra.mrb[0].mxu0 %vm44_vm1, %v34_v8  ;;  %v858_v0 = vpack.c.bf16 %v353_v63, %v352_v62  ;;  %v355_v2 = vld [vmem:[%s1319_s6 + $0x28] sm:$0xff]  ;;  %v356_v5 = vld [vmem:[%s1319_s6 + $0x30] sm:$0xff]  ;;  %v357_v7 = vld [vmem:[%s1319_s6 + $0x38] sm:$0xff] }
   0xc   :  { %727 = vmatprep.mubr.msk.f32.mxu0 %vm937_vm0, %v938_v6  ;;  %811 = vmatpush3.bf16.msra.mxu1 %v810_v22  ;;  %v861_v4 = vpack.c.bf16 %v355_v2, %v354_v1  ;;  %v864_v8 = vpack.c.bf16 %v357_v7, %v356_v5  ;;  %v358_v9 = vld [vmem:[%s1319_s6 + $0x40] sm:$0xff]  ;;  %v363_v19 = vld [vmem:[%s1319_s6 + $0x68] sm:$0xff]  ;;  %v364_v21 = vld [vmem:[%s1319_s6 + $0x70] sm:$0xff] }
   0xd   :  { %812 = vmatprep.subr.bf16.mxu1 %v936_v3  ;;  %v362_v18 = vld [vmem:[%s1319_s6 + $0x60] sm:$0xff]  ;;  %v365_v22 = vld [vmem:[%s1319_s6 + $0x78] sm:$0xff]  ;;  %v261_v39 = vld [vmem:[%s1318_s5 + $0x10] sm:$0xff] }
   0xe   :  { %v873_v20 = vpack.c.bf16 %v363_v19, %v362_v18  ;;  %v876_v23 = vpack.c.bf16 %v365_v22, %v364_v21  ;;  %v35_v24 = vld [vmem:[%s1314_s1] sm:$0x3]  ;;  %v262_v41 = vld [vmem:[%s1318_s5 + $0x18] sm:$0xff]  ;;  %v268_v57 = vld [vmem:[%s1318_s5 + $0x48] sm:$0xff]  ;;  %v255_v18 = vsub.s32 5, %v1015_v10  ;;  %v251_v19 = vrot.slane %v1021_v12, %v250_v26 }
   0xf   :  { %v259_v37 = vld [vmem:[%s1318_s5] sm:$0xff]  ;;  %v834_v42 = vpack.c.bf16 %v262_v41, %v261_v39  ;;  %v272_v2 = vld [vmem:[%s1318_s5 + $0x68] sm:$0xff]  ;;  %v273_v5 = vld [vmem:[%s1318_s5 + $0x70] sm:$0xff] }
  0x10   :  { %814 = vmatpush3.bf16.msra.mxu1 %v813_v25  ;;  %v164_v25 = vsub.s32 3, %v1015_v10  ;;  %v271_v1 = vld [vmem:[%s1318_s5 + $0x60] sm:$0xff]  ;;  %v274_v7 = vld [vmem:[%s1318_s5 + $0x78] sm:$0xff]  ;;  %v256_v22 = vrot.slane %v1021_v12, %v255_v18 }
  0x11   :  { %815 = vmatprep.subr.bf16.mxu1 %v936_v3  ;;  %v474_v39 = vld [vmem:[%s1320_s7 + $0x40] sm:$0xff] }
  0x14   :  { %817 = vmatpush3.bf16.msra.mxu1 %v816_v34 }
  0x15   :  { %818 = vmatprep.subr.bf16.mxu1 %v936_v3 }
  0x18   :  { %820 = vmatpush3.bf16.msra.mxu1 %v819_v38  ;;  %v260_v38 = vld [vmem:[%s1318_s5 + $0x8] sm:$0xff] }
  0x19   :  { %821 = vmatprep.subr.bf16.mxu1 %v936_v3 }
  0x1c   :  { %823 = vmatpush3.bf16.msra.mxu1 %v822_v40  ;;  %v831_v40 = vpack.c.bf16 %v260_v38, %v259_v37 }
  0x1d   :  { %824 = vmatprep.subr.bf16.mxu1 %v936_v3 }
  0x1e   :  { %832 = vmatpush3.bf16.msra.mxu0 %v831_v40  ;;  %v475_v40 = vld [vmem:[%s1320_s7 + $0x48] sm:$0xff] }
  0x1f   :  { %833 = vmatprep.subr.bf16.mxu0 %v936_v3 }
  0x20   :  { %826 = vmatpush3.bf16.msra.mxu1 %v825_v43 }
  0x21   :  { %827 = vmatprep.subr.bf16.mxu1 %v936_v3 }
  0x22   :  { %835 = vmatpush3.bf16.msra.mxu0 %v834_v42 }
  0x23   :  { %836 = vmatprep.subr.bf16.mxu0 %v936_v3 }
  0x24   :  { %829 = vmatpush3.bf16.msra.mxu1 %v828_v46 }
  0x25   :  { %854 = vmatprep.subr.bf16.mxu1 %v936_v3 }
  0xde   :  { %v114_v14 = vpop.f32.mrb[0].mxu0 }
  0xdf   :  { %v115_v15 = vadd.f32 %v114_v14, %v43_v13  ;;  %v659_v16 = vpop.f32.mrb[1].mxu0  ;;  %v359_v13 = vld [vmem:[%s1319_s6 + $0x48] sm:$0xff] }
  0xe0   :  { %v867_v14 = vpack.c.bf16 %v359_v13, %v358_v9  ;;  %v361_v16 = vld [vmem:[%s1319_s6 + $0x58] sm:$0xff]  ;;  %v852_v13 = vpack.c.bf16 %v274_v7, %v273_v5 }
  0xe1   :  { %118 = vadd.xlane.f32.xlu0 %v115_v15 }
 0x16e   :  { %v119_v27 = vpop.xlane.xlu0 %118 }
 0x16f   :  { %v120_v28 = vmul.f32 0.03125, %v119_v27  ;;  %v165_v27 = vrot.slane %v1021_v12, %v164_v25  ;;  %v467_v25 = vld [vmem:[%s1320_s7 + $0x8] sm:$0xff] }
 0x171   :  { %v121_v29 = vsub.f32 %v115_v15, %v120_v28  ;;  %v360_v15 = vld [vmem:[%s1319_s6 + $0x50] sm:$0xff] }
 0x172   :  { %v870_v17 = vpack.c.bf16 %v361_v16, %v360_v15 }
 0x173   :  { %v127_v30 = vsel %vm124_vm2, %v121_v29, 0.0 }
 0x174   :  { %v128_v31 = vmul.f32 %v127_v30, %v127_v30 }
 0x176   :  { %129 = vadd.xlane.f32.xlu0 %v128_v31  ;;  %v368_v31 = vsub.s32 7, %v1015_v10 }
 0x178   :  { %v369_v32 = vrot.slane %v1021_v12, %v368_v31  ;;  %v469_v31 = vld [vmem:[%s1320_s7 + $0x18] sm:$0xff] }
 0x203   :  { %v130_v47 = vpop.xlane.xlu0 %129 }
 0x204   :  { %v131_v48 = vmul.f32 0.03125, %v130_v47 }
 0x206   :  { %v132_v49 = vadd.f32 1e-05, %v131_v48  ;;  %v263_v48 = vld [vmem:[%s1318_s5 + $0x20] sm:$0xff] }
 0x208   :  { %906 = vrsqrt.f32 %v132_v49  ;;  %v264_v49 = vld [vmem:[%s1318_s5 + $0x28] sm:$0xff] }
 0x212   :  { %v907_v53 = vpop.eup %906 }
 0x213   :  { %v134_v54 = vmul.f32 %v907_v53, %v127_v30  ;;  %v265_v53 = vld [vmem:[%s1318_s5 + $0x30] sm:$0xff] }
 0x215   :  { %v139_v56 = vmul.f32 %v138_v52, %v134_v54  ;;  %v837_v52 = vpack.c.bf16 %v264_v49, %v263_v48  ;;  %v266_v54 = vld [vmem:[%s1318_s5 + $0x38] sm:$0xff]  ;;  %v479_v48 = vld [vmem:[%s1320_s7 + $0x68] sm:$0xff] }
 0x216   :  { %v33_v49 = vld [vmem:[%s1315_s2 + $0x8] sm:$0xff]  ;;  %s939_s2 = smov [#allocation2]  }
 0x217   :  { %v144_v59 = vadd.f32 %v143_v55, %v139_v56  ;;  %838 = vmatpush3.bf16.msra.mxu0 %v837_v52  ;;  %v840_v55 = vpack.c.bf16 %v266_v54, %v265_v53  ;;  %v267_v56 = vld [vmem:[%s1318_s5 + $0x40] sm:$0xff]  ;;  %v480_v53 = vld [vmem:[%s1320_s7 + $0x70] sm:$0xff]  ;;  %v481_v54 = vld [vmem:[%s1320_s7 + $0x78] sm:$0xff] }
 0x218   :  { %839 = vmatprep.subr.bf16.mxu0 %v936_v3  ;;  %v843_v58 = vpack.c.bf16 %v268_v57, %v267_v56  ;;  %v900_v57 = vpack.c.bf16 %v481_v54, %v480_v53 }
 0x219   :  { %v145_v61 = vmax.f32 %v144_v59, 0.0  ;;  %v269_v59 = vld [vmem:[%s1318_s5 + $0x50] sm:$0xff] }
 0x21b   :  { %693 = vmatmul.mubr.f32.vlgmr.msra.gmra.mrb[0].mxu1 %v145_v61  ;;  %841 = vmatpush3.bf16.msra.mxu0 %v840_v55  ;;  %v458_v55 = vrot.slane %v33_v49, %v42_v11 }
 0x21c   :  { %856 = vmatpush3.bf16.msra.mxu1 %v855_v60  ;;  %762 = vmatprep.mubr.msk.f32.mxu1 %vm937_vm0, %v938_v6  ;;  %v270_v60 = vld [vmem:[%s1318_s5 + $0x58] sm:$0xff] }
 0x21d   :  { %857 = vmatprep.subr.bf16.mxu1 %v936_v3  ;;  %842 = vmatprep.subr.bf16.mxu0 %v936_v3  ;;  %v846_v62 = vpack.c.bf16 %v270_v60, %v269_v59  ;;  %v463_v59 = vrot.slane %v33_v49, %v137_v50 }
 0x21f   :  { %844 = vmatpush3.bf16.msra.mxu0 %v843_v58 }
 0x220   :  { %859 = vmatpush3.bf16.msra.mxu1 %v858_v0  ;;  %845 = vmatprep.subr.bf16.mxu0 %v936_v3 }
 0x221   :  { %860 = vmatprep.subr.bf16.mxu1 %v936_v3 }
 0x223   :  { %847 = vmatpush3.bf16.msra.mxu0 %v846_v62 }
 0x224   :  { %862 = vmatpush3.bf16.msra.mxu1 %v861_v4  ;;  %848 = vmatprep.subr.bf16.mxu0 %v936_v3  ;;  %v849_v4 = vpack.c.bf16 %v272_v2, %v271_v1 }
 0x225   :  { %863 = vmatprep.subr.bf16.mxu1 %v936_v3 }
 0x227   :  { %850 = vmatpush3.bf16.msra.mxu0 %v849_v4 }
 0x228   :  { %865 = vmatpush3.bf16.msra.mxu1 %v864_v8  ;;  %851 = vmatprep.subr.bf16.mxu0 %v936_v3 }
 0x229   :  { %866 = vmatprep.subr.bf16.mxu1 %v936_v3 }
 0x22b   :  { %853 = vmatpush3.bf16.msra.mxu0 %v852_v13 }
 0x22c   :  { %868 = vmatpush3.bf16.msra.mxu1 %v867_v14  ;;  %878 = vmatprep.subr.bf16.mxu0 %v936_v3 }
 0x22d   :  { %869 = vmatprep.subr.bf16.mxu1 %v936_v3 }
 0x230   :  { %871 = vmatpush3.bf16.msra.mxu1 %v870_v17 }
 0x231   :  { %872 = vmatprep.subr.bf16.mxu1 %v936_v3 }
 0x234   :  { %874 = vmatpush3.bf16.msra.mxu1 %v873_v20 }
 0x235   :  { %875 = vmatprep.subr.bf16.mxu1 %v936_v3 }
 0x238   :  { %877 = vmatpush3.bf16.msra.mxu1 %v876_v23 }
 0x23b   :  { %763 = vmatmul.mubr.f32.vlgmr.msra.gmra.mrb[2].mxu1 %v35_v24  ;;  %v466_v24 = vld [vmem:[%s1320_s7] sm:$0xff] }
 0x2ee   :  { %v232_v28 = vpop.f32.mrb[0].mxu1 }
 0x2ef   :  { %v233_v29 = vadd.f32 %v232_v28, %v165_v27  ;;  %v694_v30 = vpop.f32.mrb[1].mxu1  ;;  %v879_v28 = vpack.c.bf16 %v467_v25, %v466_v24 }
 0x2f0   :  { %v468_v30 = vld [vmem:[%s1320_s7 + $0x10] sm:$0xff] }
 0x2f1   :  { %236 = vadd.xlane.f32.xlu1 %v233_v29 }
 0x30e   :  { %v436_v33 = vpop.f32.mrb[2].mxu1 }
 0x30f   :  { %v437_v34 = vadd.f32 %v436_v33, %v369_v32  ;;  %v764_v35 = vpop.f32.mrb[3].mxu1  ;;  %v882_v32 = vpack.c.bf16 %v469_v31, %v468_v30  ;;  %v470_v33 = vld [vmem:[%s1320_s7 + $0x20] sm:$0xff] }
 0x311   :  { %v441_v36 = vsel %vm440_vm3, %v437_v34, 0.0 }
 0x312   :  { %442 = vadd.xlane.f32.xlu1 %v441_v36  ;;  %v472_v36 = vld [vmem:[%s1320_s7 + $0x30] sm:$0xff] }
 0x37e   :  { %v237_v43 = vpop.xlane.xlu1 %236 }
 0x37f   :  { %v238_v44 = vmul.f32 0.03125, %v237_v43  ;;  %v891_v43 = vpack.c.bf16 %v475_v40, %v474_v39 }
 0x381   :  { %v239_v45 = vsub.f32 %v233_v29, %v238_v44  ;;  %v476_v44 = vld [vmem:[%s1320_s7 + $0x50] sm:$0xff] }
 0x383   :  { %v240_v46 = vsel %vm124_vm2, %v239_v45, 0.0  ;;  %v477_v45 = vld [vmem:[%s1320_s7 + $0x58] sm:$0xff] }
 0x384   :  { %v241_v47 = vmul.f32 %v240_v46, %v240_v46 }
 0x386   :  { %242 = vadd.xlane.f32.xlu0 %v241_v47  ;;  %v478_v47 = vld [vmem:[%s1320_s7 + $0x60] sm:$0xff] }
 0x387   :  { %v897_v52 = vpack.c.bf16 %v479_v48, %v478_v47 }
 0x39f   :  { %v443_v61 = vpop.xlane.xlu1 %442 }
 0x3a0   :  { %v444_v63 = vmul.f32 0.03125, %v443_v61 }
 0x3a2   :  { %v445_v0 = vsub.f32 %v437_v34, %v444_v63  ;;  %v471_v34 = vld [vmem:[%s1320_s7 + $0x28] sm:$0xff]  ;;  %v277_v63 = vsub.s32 6, %v1015_v10 }
 0x3a3   :  { %v885_v35 = vpack.c.bf16 %v471_v34, %v470_v33 }
 0x3a4   :  { %v1218_v8 = vsel %vm124_vm2, %v445_v0, 0.0  ;;  %v278_v0 = vrot.slane %v1021_v12, %v277_v63 }
 0x3a5   :  { %v447_v9 = vmul.f32 %v1218_v8, %v1218_v8 }
 0x3a7   :  { %v448_v14 = vsel %vm440_vm3, %v447_v9, 0.0 }
 0x3a8   :  { %449 = vadd.xlane.f32.xlu1 %v448_v14 }
 0x413   :  { %v243_v15 = vpop.xlane.xlu0 %242 }
 0x414   :  { %v244_v16 = vmul.f32 0.03125, %v243_v15 }
 0x416   :  { %v245_v17 = vadd.f32 1e-05, %v244_v16 }
 0x418   :  { %908 = vrsqrt.f32 %v245_v17 }
 0x422   :  { %v909_v20 = vpop.eup %908 }
 0x423   :  { %v247_v21 = vmul.f32 %v909_v20, %v240_v46  ;;  %v894_v46 = vpack.c.bf16 %v477_v45, %v476_v44 }
 0x425   :  { %v252_v23 = vmul.f32 %v251_v19, %v247_v21 }
 0x427   :  { %v257_v27 = vadd.f32 %v256_v22, %v252_v23 }
 0x429   :  { %v258_v29 = vmax.f32 %v257_v27, 0.0 }
 0x42b   :  { %728 = vmatmul.mubr.f32.vlgmr.msra.gmra.mrb[2].mxu0 %v258_v29 }
 0x42c   :  { %880 = vmatpush3.bf16.msra.mxu0 %v879_v28  ;;  %797 = vmatprep.mubr.msk.f32.mxu0 %vm937_vm0, %v938_v6  ;;  %v473_v6 = vld [vmem:[%s1320_s7 + $0x38] sm:$0xff]  ;;  %s563_s7 = sshll.u32 %s939_s2, 4  ;;  %s564_s7 = int_to_ptr.vmem [resolvable:$true] %s563_s7 }
 0x42d   :  { %881 = vmatprep.subr.bf16.mxu0 %v936_v3  ;;  %v888_v37 = vpack.c.bf16 %v473_v6, %v472_v36  ;;  %s912_s24 = scalar_lea.vmem %s564_s7, 128  ;;  %p917_p1 = scmp.lt.s32.totalorder %s564_s7, %s564_s7 }
 0x42e   :  { %p913_p0 = scmp.ne.s32.totalorder %s564_s7, %s912_s24  ;;  %p918_p2 = scmp.lt.s32.totalorder %s912_s24, %s912_s24 }
 0x430   :  { %883 = vmatpush3.bf16.msra.mxu0 %v882_v32  ;;  %p919_p3 = por %p918_p2, %p917_p1 }
 0x431   :  { %884 = vmatprep.subr.bf16.mxu0 %v936_v3 }
 0x432   :  { %p920_p4 = pnand %p919_p3, %p913_p0 }
 0x434   :  { %886 = vmatpush3.bf16.msra.mxu0 %v885_v35 }
 0x435   :  { %v450_v38 = vpop.xlane.xlu1 %449  ;;  %887 = vmatprep.subr.bf16.mxu0 %v936_v3 }
 0x436   :  { %v451_v41 = vmul.f32 0.03125, %v450_v38 }
 0x438   :  { %v452_v42 = vadd.f32 1e-05, %v451_v41  ;;  %889 = vmatpush3.bf16.msra.mxu0 %v888_v37 }
 0x439   :  { %890 = vmatprep.subr.bf16.mxu0 %v936_v3 }
 0x43a   :  { %910 = vrsqrt.f32 %v452_v42 }
 0x43c   :  { %892 = vmatpush3.bf16.msra.mxu0 %v891_v43 }
 0x43d   :  { %893 = vmatprep.subr.bf16.mxu0 %v936_v3 }
 0x440   :  { %895 = vmatpush3.bf16.msra.mxu0 %v894_v46 }
 0x441   :  { %896 = vmatprep.subr.bf16.mxu0 %v936_v3 }
 0x444   :  { %v911_v56 = vpop.eup %910  ;;  %898 = vmatpush3.bf16.msra.mxu0 %v897_v52 }
 0x445   :  { %v454_v58 = vmul.f32 %v911_v56, %v1218_v8  ;;  %899 = vmatprep.subr.bf16.mxu0 %v936_v3 }
 0x447   :  { %v459_v60 = vmul.f32 %v458_v55, %v454_v58 }
 0x448   :  { %901 = vmatpush3.bf16.msra.mxu0 %v900_v57 }
 0x449   :  { %v464_v61 = vadd.f32 %v463_v59, %v459_v60 }
 0x44b   :  { %v465_v62 = vmax.f32 %v464_v61, 0.0 }
 0x44d   :  { %798 = vmatmul.mubr.f32.vlgmr.msra.gmra.mrb[4].mxu0 %v465_v62 }
 0x4fe   :  { %v345_v11 = vpop.f32.mrb[2].mxu0 }
 0x4ff   :  { %v346_v1 = vadd.f32 %v345_v11, %v278_v0  ;;  %v729_v2 = vpop.f32.mrb[3].mxu0 }
 0x501   :  { %349 = vst [vmem:[#allocation2] sm:$0xff] %v346_v1 }
 0x502   :  { %923 = shalt.err (!%p920_p4)
}
 0x503   :  { %s924_s27 = scalar_lea.hbm %s1321_s8, 128 }
 0x504   :  { %p925_p5 = scmp.ne.s32.totalorder %s1321_s8, %s924_s27  ;;  %p928_p6 = scmp.lt.u32.totalorder %s924_s27, %s1321_s8 }
 0x506   :  { %p930_p7 = pnand %p928_p6, %p925_p5 }
 0x508   :  { %933 = shalt.err (!%p930_p7)
}
 0x509   :  { %566 = dma.vmem_to_hbm [thread:$0]  %s564_s7, 128, %s1321_s8, [#allocation3]   ;;  %v485_v3 = vrot.slane %v33_v49, %v142_v51 }
 0x520   :  { %v552_v12 = vpop.f32.mrb[4].mxu0 }
 0x521   :  { %v553_v50 = vadd.f32 %v552_v12, %v485_v3  ;;  %v799_v4 = vpop.f32.mrb[5].mxu0 }
 0x523   :  { %556 = vst [vmem:[%s1322_s9] sm:$0x3] %v553_v50 }
 0x524   :  { %934 = dma.done.wait [#allocation3], 128  }
 0x525   :  { %935 = vsyncadd [#allocation3], 4294967168 }
 0x526   :  { %574 = vsyncpa [#allocation3], 1 }

</bundles_post_ra>
